<compile_context>
chip_gen: v5e
topology: v5e:2x2
jax: 0.10.0
libtpu: 0.0.40
codegen_flags: <defaults>
</compile_context>

<pallas_src>
import jax
import jax.numpy as jnp
from jax.experimental import pallas as pl
from jax.experimental.pallas import tpu as pltpu


def _round_up(x: int, m: int) -> int:
    return ((x + m - 1) // m) * m


def _device_vmem_bytes() -> int:
    try:
        cap = int(pltpu.get_tpu_info().vmem_capacity_bytes)
        if cap > 0:
            return cap
    except Exception:
        pass
    return 64 << 20  # conservative fallback (v7x per-TensorCore VMEM)


def _choose_tile_rows(n: int, c: int, logits_itemsize: int, sublane: int) -> int:
    """Rows per tile, sized against the lane-padded, double-buffered VMEM cost."""
    c_lanes = _round_up(max(c, 128), 128)
    # double-buffered logits block + double-buffered (lane-padded) labels block
    per_row = 2 * (c_lanes * logits_itemsize + 128 * 4)
    budget = max(_device_vmem_bytes() // 4, 4 << 20)
    tn = max(sublane, (budget // per_row) // sublane * sublane)
    tn = min(tn, 8192)                       # keep per-step payload ~1-4 MiB
    tn = min(tn, _round_up(n, sublane))      # never exceed the (rounded) batch
    return tn


def _forward_t_loss_kernel(n_valid_ref, logits_ref, labels_ref, t_ref, out_ref):
    i = pl.program_id(0)
    n_valid = n_valid_ref[0]

    logits = logits_ref[...].astype(jnp.float32)   # (tn, C)
    labels = labels_ref[...]                       # (tn, 1) int32
    T = t_ref[...].astype(jnp.float32)             # (C, C)

    tn, C = logits.shape

    # softmax(y_pred, dim=-1): exact reciprocal + multiply
    m = jnp.max(logits, axis=-1, keepdims=True)
    e = jnp.exp(logits - m)
    s = jnp.sum(e, axis=-1, keepdims=True)
    p = e * pl.reciprocal(s, approx=False)

    # NOTE: reference's `y_pred / y_pred.sum(-1, keepdims=True)` after softmax
    # is a no-op (ULP-level) and is intentionally skipped.
    p = jnp.clip(p, 1e-11, 1.0 - 1e-11)

    # y_pred @ T on the MXU, f32 accumulation
    pt = jnp.dot(p, T, preferred_element_type=jnp.float32)   # (tn, C)

    # Select the true-class probability (one_hot * pt summed over C) BEFORE
    # the log -> only tn transcendentals instead of tn*C.
    class_ids = jax.lax.broadcasted_iota(jnp.int32, (tn, C), 1)
    sel = jnp.sum(jnp.where(class_ids == labels, pt, 0.0),
                  axis=-1, keepdims=True)                     # (tn, 1)
    per_sample = -jnp.log(sel)

    # Mask rows beyond the valid batch (partial last block / caller padding).
    row_ids = i * tn + jax.lax.broadcasted_iota(jnp.int32, (tn, 1), 0)
    per_sample = jnp.where(row_ids < n_valid, per_sample, 0.0)

    # Lane-dense (8, 128) partial-sum block -> unmasked vector stores.
    out_ref[...] = jnp.full((8, 128), jnp.sum(per_sample), dtype=jnp.float32)


def forward_t_loss(y_pred, y_true, T, *, n_valid=None, tile_n=None):
    """ForwardTLoss forward pass.

    y_pred: (N, C) float logits, y_true: (N,) int labels, T: (C, C).
    n_valid: optional runtime count of valid rows (<= N); rows >= n_valid are
             ignored and the mean divides by n_valid.  Defaults to N.
    """
    N, C = y_pred.shape
    assert T.shape == (C, C)

    logits_isz = jnp.dtype(y_pred.dtype).itemsize
    sublane = 8 * max(1, 4 // logits_isz)          # f32->8, bf16->16, 8-bit->32

    if tile_n is None:
        tn = _choose_tile_rows(N, C, logits_isz, sublane)
    else:
        tn = max(sublane, _round_up(min(tile_n, _round_up(N, sublane)), sublane))

    num_tiles = pl.cdiv(N, tn)

    # NO jnp.pad of logits: partial last block + in-kernel mask handle ragged N.
    labels = y_true.astype(jnp.int32).reshape(N, 1)
    if n_valid is None:
        n_valid = N
    n_valid_arr = jnp.asarray(n_valid, dtype=jnp.int32).reshape(1)

    # Explicit VMEM budget from the real (lane-padded, double-buffered) footprint.
    c_lanes = _round_up(max(C, 128), 128)
    t_foot = 2 * _round_up(C, 8) * _round_up(C, 128) * jnp.dtype(T.dtype).itemsize
    footprint = 2 * tn * (c_lanes * logits_isz + 128 * 4) + t_foot + 2 * 8 * 128 * 4
    vmem_cap = _device_vmem_bytes()
    vmem_limit = min(max(footprint + (8 << 20), 16 << 20), vmem_cap * 3 // 4)

    # v7x: actually split batch tiles across the two TensorCores.
    try:
        kind = jax.devices()[0].device_kind.lower()
    except Exception:
        kind = ""
    core_parallel = getattr(pltpu, "CORE_PARALLEL", None)
    if num_tiles >= 2 and "v7" in kind and core_parallel is not None:
        dims = (core_parallel,)
    else:
        dims = ("parallel",)

    cost = pl.CostEstimate(
        flops=2 * N * C * C,
        transcendentals=N * (C + 1),
        bytes_accessed=(N * C * logits_isz + N * 4
                        + C * C * jnp.dtype(T.dtype).itemsize
                        + num_tiles * 8 * 128 * 4),
    )

    grid_spec = pltpu.PrefetchScalarGridSpec(
        num_scalar_prefetch=1,
        grid=(num_tiles,),
        in_specs=[
            pl.BlockSpec((tn, C), lambda i, nv: (i, 0)),   # logits tile (native dtype)
            pl.BlockSpec((tn, 1), lambda i, nv: (i, 0)),   # labels tile
            pl.BlockSpec((C, C), lambda i, nv: (0, 0)),    # T: VMEM-resident
        ],
        out_specs=pl.BlockSpec((8, 128), lambda i, nv: (i, 0)),
    )

    out = pl.pallas_call(
        _forward_t_loss_kernel,
        out_shape=jax.ShapeDtypeStruct((num_tiles * 8, 128), jnp.float32),
        grid_spec=grid_spec,
        compiler_params=pltpu.CompilerParams(
            dimension_semantics=dims,
            vmem_limit_bytes=int(vmem_limit)),
        cost_estimate=cost,
    )(n_valid_arr, y_pred, labels, T)

    partials = out.reshape(num_tiles, 8, 128)[:, 0, 0]
    return jnp.sum(partials) / n_valid_arr[0].astype(jnp.float32)


def _reference(y_pred, y_true, T):
    # pure-JAX mirror of the PyTorch forward
    C = T.shape[0]
    one_hot = jax.nn.one_hot(y_true, C, dtype=jnp.float32)
    p = jax.nn.softmax(y_pred.astype(jnp.float32), axis=-1)
    p = p / jnp.sum(p, axis=-1, keepdims=True)
    p = jnp.clip(p, 1e-11, 1.0 - 1e-11)
    return -jnp.mean(jnp.sum(one_hot * jnp.log(p @ T), axis=-1))


if __name__ == "__main__":
    key = jax.random.PRNGKey(0)
    eps = 0.3

    # ---- small shape consistent with the module ------------------------------
    N, C = 8, 32
    k1, k2 = jax.random.split(key)
    y_pred = jax.random.normal(k1, (N, C), dtype=jnp.float32)
    y_true = jax.random.randint(k2, (N,), 0, C, dtype=jnp.int32)
    T = (1.0 - eps) * jnp.eye(C, dtype=jnp.float32) + (eps / C) * jnp.ones(
        (C, C), dtype=jnp.float32)

    loss = forward_t_loss(y_pred, y_true, T)
    jax.block_until_ready(loss)
    ref = _reference(y_pred, y_true, T)
    assert jnp.allclose(loss, ref, rtol=1e-5, atol=1e-5), (loss, ref)

    # ---- ragged batch (partial last tile, no wrapper-side padding) -----------
    N2 = 300
    k3, k4 = jax.random.split(k2)
    y_pred2 = jax.random.normal(k3, (N2, C), dtype=jnp.float32)
    y_true2 = jax.random.randint(k4, (N2,), 0, C, dtype=jnp.int32)
    loss2 = forward_t_loss(y_pred2, y_true2, T, tile_n=128)   # 3 tiles, last partial
    jax.block_until_ready(loss2)
    ref2 = _reference(y_pred2, y_true2, T)
    assert jnp.allclose(loss2, ref2, rtol=1e-5, atol=1e-5), (loss2, ref2)

    print("KERNEL_OK")
</pallas_src>

<mosaic_0001>
module attributes {stable_mosaic.version = 11 : i64} {
  func.func @_forward_t_loss_kernel(%arg0: i32, %arg1: memref<1xi32, #tpu.memory_space<smem>>, %arg2: memref<8x32xf32, #tpu.memory_space<vmem>>, %arg3: memref<8x1xi32, #tpu.memory_space<vmem>>, %arg4: memref<32x32xf32, #tpu.memory_space<vmem>>, %arg5: memref<8x128xf32, #tpu.memory_space<vmem>>) attributes {dimension_semantics = [#tpu.dimension_semantics<parallel>], iteration_bounds = array<i64: 1>, scalar_prefetch = 1 : i64, scratch_operands = 0 : i64, tpu.core_type = #tpu.core_type<tc>, window_params = [{transform_indices = @transform_0, window_bounds = array<i64: 8, 32>}, {transform_indices = @transform_1, window_bounds = array<i64: 8, 1>}, {pipeline_mode = #tpu.pipeline_mode<synchronous>, transform_indices = @transform_2, window_bounds = array<i64: 32, 32>}, {transform_indices = @transform_3, window_bounds = array<i64: 8, 128>}]} {
    %c0 = arith.constant 0 : index
    %0 = memref.load %arg1[%c0] : memref<1xi32, #tpu.memory_space<smem>>
    %c0_0 = arith.constant 0 : index
    %c0_1 = arith.constant 0 : index
    %1 = vector.load %arg2[%c0_0, %c0_1] : memref<8x32xf32, #tpu.memory_space<vmem>>, vector<8x32xf32>
    %c0_2 = arith.constant 0 : index
    %c0_3 = arith.constant 0 : index
    %2 = vector.load %arg3[%c0_2, %c0_3] : memref<8x1xi32, #tpu.memory_space<vmem>>, vector<8x1xi32>
    %c0_4 = arith.constant 0 : index
    %c0_5 = arith.constant 0 : index
    %3 = vector.load %arg4[%c0_4, %c0_5] : memref<32x32xf32, #tpu.memory_space<vmem>>, vector<32x32xf32>
    %cst = arith.constant dense<0xFF800000> : vector<8xf32>
    %4 = vector.multi_reduction <maximumf>, %1, %cst [1] : vector<8x32xf32> to vector<8xf32>
    %5 = vector.shape_cast %4 : vector<8xf32> to vector<8x1xf32>
    %6 = vector.broadcast %5 : vector<8x1xf32> to vector<8x32xf32>
    %7 = arith.subf %1, %6 : vector<8x32xf32>
    %8 = math.exp %7 : vector<8x32xf32>
    %cst_6 = arith.constant dense<0.000000e+00> : vector<8xf32>
    %9 = vector.multi_reduction <add>, %8, %cst_6 [1] : vector<8x32xf32> to vector<8xf32>
    %10 = vector.shape_cast %9 : vector<8xf32> to vector<8x1xf32>
    %11 = tpu.reciprocal %10 : vector<8x1xf32> -> vector<8x1xf32>
    %12 = vector.broadcast %11 : vector<8x1xf32> to vector<8x32xf32>
    %13 = arith.mulf %8, %12 : vector<8x32xf32>
    %cst_7 = arith.constant 9.99999996E-12 : f32
    %cst_8 = arith.constant 1.000000e+00 : f32
    %14 = vector.broadcast %cst_7 : f32 to vector<8x32xf32>
    %15 = arith.maximumf %14, %13 : vector<8x32xf32>
    %16 = vector.broadcast %cst_8 : f32 to vector<8x32xf32>
    %17 = arith.minimumf %16, %15 : vector<8x32xf32>
    %cst_9 = arith.constant dense<0.000000e+00> : vector<8x32xf32>
    %18 = tpu.matmul %17, %3, %cst_9 {dimension_numbers = #tpu.dot_dimension_numbers<[1], [0], [0], [1], [0, 0, 1, 1], [], []>} : vector<8x32xf32>, vector<32x32xf32>, vector<8x32xf32> -> vector<8x32xf32>
    %19 = tpu.iota {dimensions = array<i32: 1>} : vector<8x32xi32>
    %20 = vector.broadcast %2 : vector<8x1xi32> to vector<8x32xi32>
    %21 = arith.cmpi eq, %19, %20 : vector<8x32xi32>
    %cst_10 = arith.constant 0.000000e+00 : f32
    %22 = vector.broadcast %cst_10 : f32 to vector<8x32xf32>
    %23 = arith.select %21, %18, %22 : vector<8x32xi1>, vector<8x32xf32>
    %cst_11 = arith.constant dense<0.000000e+00> : vector<8xf32>
    %24 = vector.multi_reduction <add>, %23, %cst_11 [1] : vector<8x32xf32> to vector<8xf32>
    %25 = vector.shape_cast %24 : vector<8xf32> to vector<8x1xf32>
    %26 = math.log %25 : vector<8x1xf32>
    %cst_12 = arith.constant 0.000000e+00 : f32
    %27 = vector.broadcast %cst_12 : f32 to vector<8x1xf32>
    %28 = arith.subf %27, %26 : vector<8x1xf32>
    %c8_i32 = arith.constant 8 : i32
    %29 = arith.muli %arg0, %c8_i32 : i32
    %30 = tpu.iota {dimensions = array<i32: 0>} : vector<8x1xi32>
    %31 = vector.broadcast %29 : i32 to vector<8x1xi32>
    %32 = arith.addi %31, %30 : vector<8x1xi32>
    %33 = vector.broadcast %0 : i32 to vector<8x1xi32>
    %34 = arith.cmpi slt, %32, %33 : vector<8x1xi32>
    %cst_13 = arith.constant 0.000000e+00 : f32
    %35 = vector.broadcast %cst_13 : f32 to vector<8x1xf32>
    %36 = arith.select %34, %28, %35 : vector<8x1xi1>, vector<8x1xf32>
    %37 = vector.shape_cast %36 : vector<8x1xf32> to vector<1x8x1xf32>
    %cst_14 = arith.constant dense<0.000000e+00> : vector<1xf32>
    %38 = vector.multi_reduction <add>, %37, %cst_14 [1, 2] : vector<1x8x1xf32> to vector<1xf32>
    %39 = vector.shape_cast %38 : vector<1xf32> to vector<1x1x1xf32>
    %40 = vector.extract %39[0, 0, 0] : f32 from vector<1x1x1xf32>
    %41 = vector.broadcast %40 : f32 to vector<8x128xf32>
    %c0_15 = arith.constant 0 : index
    %c0_16 = arith.constant 0 : index
    %42 = vector.load %arg5[%c0_15, %c0_16] : memref<8x128xf32, #tpu.memory_space<vmem>>, vector<8x128xf32>
    tpu.vector_store %arg5[%c0_15, %c0_16], %41 {strides = array<i32>} : memref<8x128xf32, #tpu.memory_space<vmem>>, vector<8x128xf32>,
    return
  }
  func.func @transform_0(%arg0: i32, %arg1: memref<1xi32, #tpu.memory_space<smem>>) -> (i32, i32) {
    %c0_i32 = arith.constant 0 : i32
    %c0_i32_0 = arith.constant 0 : i32
    return %arg0, %c0_i32 : i32, i32
  }
  func.func @transform_1(%arg0: i32, %arg1: memref<1xi32, #tpu.memory_space<smem>>) -> (i32, i32) {
    %c0_i32 = arith.constant 0 : i32
    %c0_i32_0 = arith.constant 0 : i32
    return %arg0, %c0_i32 : i32, i32
  }
  func.func @transform_2(%arg0: i32, %arg1: memref<1xi32, #tpu.memory_space<smem>>) -> (i32, i32) {
    %c0_i32 = arith.constant 0 : i32
    %c0_i32_0 = arith.constant 0 : i32
    %c0_i32_1 = arith.constant 0 : i32
    return %c0_i32, %c0_i32_0 : i32, i32
  }
  func.func @transform_3(%arg0: i32, %arg1: memref<1xi32, #tpu.memory_space<smem>>) -> (i32, i32) {
    %c0_i32 = arith.constant 0 : i32
    %c0_i32_0 = arith.constant 0 : i32
    return %arg0, %c0_i32 : i32, i32
  }
}

</mosaic_0001>

<bundles_post_ra>
// kernel: tpu_custom_call.1
= control target key start
LH: loop header
LB: loop body
LE: loop exit
PB: predicated region body
PF: predicated region fallthrough
CT: control target
= control target key end

     0   :  { %10 = vsyncpa [#allocation5], 0  ;;  %s258_s0 = inlined_call_operand.<no memory space> [shape: s32[1], index: 0, kind: input, shape index: {}]   ;;  %s259_s1 = inlined_call_operand.vmem [shape: f32[8,32], index: 1, kind: input, shape index: {}]   ;;  %s260_s2 = inlined_call_operand.vmem [shape: s32[8,1], index: 2, kind: input, shape index: {}]   ;;  %s261_s3 = inlined_call_operand.hbm [shape: f32[32,32], index: 3, kind: input, shape index: {}]   ;;  %s262_s4 = inlined_call_operand.hbm [shape: f32[8,128], index: 4, kind: output, shape index: {}]  }
   0x1   :  { %11 = vsyncpa [#allocation6], 0  ;;  %s20_s17 = sshll.u32 %s261_s3, 4  ;;  %s209_s18 = smov [#allocation4]   ;;  %s21_s17 = int_to_ptr.hbm [resolvable:$true] %s20_s17 }
   0x2   :  { %s22_s19 = sshll.u32 %s209_s18, 4  ;;  %s210_s20 = smov 128   ;;  %s23_s19 = int_to_ptr.vmem [resolvable:$true] %s22_s19 }
   0x3   :  { %s211_s21 = smov 8  }
   0x4   :  { %28 = dma.hbm_to_vmem [thread:$0]  %s21_s17, 512, %s23_s19, [#allocation5], %s210_s20, %s210_s20, %s211_s21  }
   0x5   :  { %205 = dma.done.wait [#allocation5], 512  }
   0x6   :  { %206 = vsyncadd [#allocation5], 4294966784  ;;  %vm40_vm0 = vcmask 261120   ;;  %v34_v0 = vld [vmem:[%s259_s1] sm:$0xff]  ;;  %v39_v7 = vld [vmem:[#allocation4 + $0x18] sm:$0xff]  ;;  %v212_v12 = vmov 0   ;;  %v90_v27 = vlaneseq  ;;  %v108_v35 = vstv %s258_s0 }
   0x7   :  { %v41_v1 = vsel %vm40_vm0, %v34_v0, -inf  ;;  %v38_v8 = vld [vmem:[#allocation4 + $0x10] sm:$0xff]  ;;  %82 = vmatpush.msra.mxu0 %v39_v7  ;;  %v37_v9 = vld [vmem:[#allocation4 + $0x8] sm:$0xff]  ;;  %v36_v10 = vld [vmem:[#allocation4] sm:$0xff]  ;;  %149 = vset.pattern.permute.xlu1 %v212_v12  ;;  %vm111_vm7 = vcmask 7168   ;;  %s213_s25 = smov [#allocation7]  }
   0x8   :  { %42 = vmax.xlane.f32.xlu0 %v41_v1  ;;  %v35_v11 = vld [vmem:[%s260_s2] sm:$0xff]  ;;  %v91_v28 = vand.u32 127, %v90_v27  ;;  %v105_v34 = vshrl.u32 %v90_v27, 7  ;;  %s129_s26 = sshll.u32 %s213_s25, 4  ;;  %s131_s28 = sshll.u32 %s262_s4, 4  ;;  %s130_s26 = int_to_ptr.vmem [resolvable:$true] %s129_s26  ;;  %s132_s28 = int_to_ptr.hbm [resolvable:$true] %s131_s28 }
   0x9   :  { %83 = vmatpush.msra.mxu0 %v38_v8  ;;  %150 = vset.pattern.permute.xlu0 %v212_v12 }
   0xa   :  { %93 = vperm.xlu1 %149, %v35_v11   ;;  %vm109_vm6 = vcmp.lt.s32.totalorder %v105_v34, %v108_v35 }
   0xb   :  { %84 = vmatpush.msra.mxu0 %v37_v9 }
   0xd   :  { %85 = vmatpush.msra.mxu0 %v36_v10 }
  0x7b   :  { %v43_v2 = vpop.xlane.xlu0 %42 }
  0x7c   :  { %v44_v3 = vsub.f32 %v34_v0, %v43_v2  ;;  %v94_v29 = vpop.permute.xlu1 %93 }
  0x7d   :  { %vm95_vm5 = vcmp.eq.s32.totalorder %v91_v28, %v94_v29 }
  0x7e   :  { %v45_v4 = vmul.f32 1.442695, %v44_v3 }
  0x80   :  { %151 = vpow2.f32 %v45_v4 }
  0x86   :  { %v152_v5 = vpop.eup %151 }
  0x87   :  { %v47_v6 = vsel %vm40_vm0, %v152_v5, 0.0 }
  0x88   :  { %48 = vadd.xlane.f32.xlu0 %v47_v6 }
  0xfb   :  { %v49_v13 = vpop.xlane.xlu0 %48 }
  0xfc   :  { %153 = vrcp.f32 %v49_v13  ;;  %v61_v17 = vand.u32 2147483648, %v49_v13  ;;  %v59_v19 = vand.u32 2147483647, %v49_v13  ;;  %vm55_vm2 = vweird.f32 %v49_v13 }
  0xfe   :  { %v62_v21 = vor.u32 1.1754944e-38, %v61_v17  ;;  %vm60_vm4 = vcmp.eq.f32.partialorder %v59_v19, 8.507059e+37 }
 0x102   :  { %v154_v14 = vpop.eup %153 }
 0x103   :  { %v51_v15 = vmul.f32 %v154_v14, %v49_v13  ;;  %vm56_vm1 = vweird.f32 %v154_v14 }
 0x104   :  { %vm57_vm3 = vmor %vm55_vm2, %vm56_vm1 }
 0x105   :  { %v52_v16 = vsub.f32 1.0, %v51_v15 }
 0x107   :  { %v53_v18 = vmul.f32 %v154_v14, %v52_v16 }
 0x109   :  { %v54_v20 = vadd.f32 %v154_v14, %v53_v18 }
 0x10b   :  { %v58_v22 = vsel %vm57_vm3, %v154_v14, %v54_v20 }
 0x10c   :  { %v63_v23 = vsel %vm60_vm4, %v62_v21, %v58_v22 }
 0x10d   :  { %v64_v24 = vmul.f32 %v152_v5, %v63_v23 }
 0x10f   :  { %v65_v25 = vmax.f32 %v64_v24, 1e-11 }
 0x111   :  { %v66_v26 = vmin.f32 %v65_v25, 1.0 }
 0x113   :  { %141 = vmatmul.msk.f32.vlgmr.msra.gmra.mxu0 %vm40_vm0, %v66_v26 }
 0x190   :  { %v87_v30 = vpop.f32.mrf.mxu0 }
 0x191   :  { %v96_v31 = vsel %vm95_vm5, %v87_v30, 0.0 }
 0x192   :  { %v97_v32 = vsel %vm40_vm0, %v96_v31, 0.0 }
 0x193   :  { %98 = vadd.xlane.f32.xlu1 %v97_v32 }
 0x206   :  { %v99_v33 = vpop.xlane.xlu1 %98 }
 0x207   :  { %155 = vlog2.f32 %v99_v33 }
 0x20d   :  { %v156_v36 = vpop.eup %155 }
 0x20e   :  { %v101_v37 = vmul.f32 0.6931472, %v156_v36 }
 0x210   :  { %v102_v38 = vsub.f32 0.0, %v101_v37 }
 0x212   :  { %v110_v39 = vsel %vm109_vm6, %v102_v38, 0.0 }
 0x213   :  { %v112_v40 = vsel %vm111_vm7, %v110_v39, 0.0 }
 0x214   :  { %113 = vadd.xlane.f32.xlu2 %v112_v40 }
 0x287   :  { %v114_v41 = vpop.xlane.xlu2 %113 }
 0x288   :  { %v115_v42 = vrot.slane %v114_v41, 4 }
 0x28a   :  { %v116_v43 = vadd.f32 %v115_v42, %v114_v41 }
 0x28c   :  { %v117_v44 = vrot.slane %v116_v43, 2 }
 0x28e   :  { %v118_v45 = vadd.f32 %v117_v44, %v116_v43 }
 0x290   :  { %v119_v46 = vrot.slane %v118_v45, 1 }
 0x292   :  { %v120_v47 = vadd.f32 %v119_v46, %v118_v45 }
 0x294   :  { %142 = vpush %v120_v47 }
 0x2c5   :  { %s143_s29 = spop %142 }
 0x2c6   :  { %v122_v48 = vstv %s143_s29 }
 0x2c7   :  { %123 = vst [vmem:[#allocation7] sm:$0xff] %v122_v48 }
 0x2c8   :  { %134 = dma.vmem_to_hbm [thread:$0]  %s130_s26, 128, %s132_s28, [#allocation6]  }
 0x2c9   :  { %207 = dma.done.wait [#allocation6], 128  }
 0x2ca   :  { %208 = vsyncadd [#allocation6], 4294967168 }
 0x2cb   :  { %139 = vsyncpa [#allocation5], 1 }
 0x2cc   :  { %140 = vsyncpa [#allocation6], 1 }

</bundles_post_ra>
